<compile_context>
chip_gen: v6e
topology: v6e:2x2x1
jax: 0.10.0
libtpu: 0.0.40
codegen_flags: <defaults>
</compile_context>

<pallas_src>
import functools

import jax
import jax.numpy as jnp
from jax.experimental import pallas as pl
from jax.experimental.pallas import tpu as pltpu

GROUPS = 32   # nn.GroupNorm(32, C)
EPS = 1e-5    # nn.GroupNorm default eps


# ----------------------------- in-kernel building blocks -----------------------------

def _start_halo_dma(src_hbm, halo_ref, sem, n, t, TH, H):
    """Issue DMAs for the top/bottom neighbour rows of tile t (clamped at image edges).

    Returns the two copy descriptors so the caller can wait after doing useful work.
    Boundary rows are clamped (duplicate row); they are overwritten with zeros before use.
    """
    base = t * TH
    top = jnp.maximum(base - 1, 0)
    bot = jnp.minimum(base + TH, H - 1)
    c_top = pltpu.make_async_copy(src_hbm.at[n, pl.ds(top, 1)],
                                  halo_ref.at[pl.ds(0, 1)], sem.at[0])
    c_bot = pltpu.make_async_copy(src_hbm.at[n, pl.ds(bot, 1)],
                                  halo_ref.at[pl.ds(1, 1)], sem.at[1])
    c_top.start()
    c_bot.start()
    return c_top, c_bot


def _fill_main_act(act_ref, x_tile, scale, shift):
    """act[1:TH+1, 1:W+1, :] = SiLU(x*scale + shift); also zero the left/right pad columns."""
    TH2, Wp2, C = act_ref.shape
    TH, W = TH2 - 2, Wp2 - 2
    y = x_tile.astype(jnp.float32) * scale + shift
    y = y * jax.nn.sigmoid(y)                               # SiLU (f32 — no bf16 VPU on v5e)
    act_ref[1:TH + 1, 1:W + 1, :] = y

    zc = jnp.zeros((TH + 2, 1, C), act_ref.dtype)           # conv zero-padding, left/right
    act_ref[:, 0:1, :] = zc
    act_ref[:, W + 1:W + 2, :] = zc


def _fill_halo_row(act_ref, halo_ref, slot, dst_row, scale, shift, interior):
    """Fill one halo row of act: activated neighbour row, or zeros at the image boundary."""
    TH2, Wp2, C = act_ref.shape
    W = Wp2 - 2

    @pl.when(interior)
    def _():
        y = halo_ref[slot:slot + 1].astype(jnp.float32) * scale + shift   # (1, W, C)
        y = y * jax.nn.sigmoid(y)
        act_ref[dst_row:dst_row + 1, 1:W + 1, :] = y.astype(act_ref.dtype)

    @pl.when(jnp.logical_not(interior))
    def _():
        act_ref[dst_row:dst_row + 1, 1:W + 1, :] = jnp.zeros((1, W, C), act_ref.dtype)


def _conv3x3(act_ref, w_ref, b_ref):
    """3x3 / stride 1 / pad 1 conv on the padded window as 9 accumulating MXU matmuls.

    Each dot is (TH*W, Cin) @ (Cin, Cout) with bf16 operands and f32 accumulation; no im2col
    patch is materialized (3 ref loads, value slices along the cheap leading dim).
    """
    TH2, Wp2, C = act_ref.shape
    TH, W = TH2 - 2, Wp2 - 2
    Cout = w_ref.shape[-1]
    acc = jnp.zeros((TH * W, Cout), jnp.float32)
    for kx in range(3):
        col = act_ref[:, kx:kx + W, :].astype(jnp.bfloat16)       # (TH+2, W, C)
        for ky in range(3):
            part = col[ky:ky + TH].reshape(TH * W, C)
            wk = w_ref[(ky * 3 + kx) * C:(ky * 3 + kx + 1) * C, :]
            acc = acc + jnp.dot(part, wk, preferred_element_type=jnp.float32)
    return acc + b_ref[...]                                        # (TH*W, Cout) f32


# ----------------------------- kernels -----------------------------

def _gn_stats_kernel(x_ref, mom_ref):
    """Per-tile channel sum / sum^2 for GroupNorm-1 (reduced over tiles in JAX glue)."""
    TH, W, C = x_ref.shape
    xf = x_ref[...].astype(jnp.float32).reshape(TH * W, C)
    mom_ref[0:1, :] = jnp.sum(xf, axis=0, keepdims=True)
    mom_ref[1:2, :] = jnp.sum(xf * xf, axis=0, keepdims=True)


def _norm_conv1_kernel(x_ref, x_hbm, aff_ref, w_ref, b_ref,      # inputs
                       h_ref, mom_ref,                            # outputs
                       halo_ref, act_ref, sem):                   # scratch
    n, t = pl.program_id(0), pl.program_id(1)
    T = pl.num_programs(1)
    TH, W, Cin = x_ref.shape
    H = T * TH

    # 1) start halo-row DMAs (hidden behind the elementwise work below)
    c_top, c_bot = _start_halo_dma(x_hbm, halo_ref, sem, n, t, TH, H)

    # 2) main tile: GN1 affine + SiLU
    scale = aff_ref[0:1, :].reshape(1, 1, Cin)
    shift = aff_ref[1:2, :].reshape(1, 1, Cin)
    _fill_main_act(act_ref, x_ref[...], scale, shift)

    # 3) halo rows
    c_top.wait()
    c_bot.wait()
    _fill_halo_row(act_ref, halo_ref, 0, 0, scale, shift, t > 0)
    _fill_halo_row(act_ref, halo_ref, 1, TH + 1, scale, shift, t < T - 1)

    # 4) conv1
    acc = _conv3x3(act_ref, w_ref, b_ref)                         # (TH*W, Cout) f32

    # 5) GroupNorm-2 partial statistics of the bf16-rounded conv1 output (what pass 3 reads)
    hb = acc.astype(h_ref.dtype)
    hf = hb.astype(jnp.float32)
    mom_ref[0:1, :] = jnp.sum(hf, axis=0, keepdims=True)
    mom_ref[1:2, :] = jnp.sum(hf * hf, axis=0, keepdims=True)

    h_ref[...] = hb.reshape(TH, W, -1)


def _norm_conv2_res_kernel(h_tile_ref, h_hbm, x_ref, aff_ref, w_ref, b_ref, *rest, use_proj):
    if use_proj:
        wr_ref, br_ref, out_ref, halo_ref, act_ref, sem = rest
    else:
        out_ref, halo_ref, act_ref, sem = rest

    n, t = pl.program_id(0), pl.program_id(1)
    T = pl.num_programs(1)
    TH, W, Cout = out_ref.shape
    H = T * TH

    c_top, c_bot = _start_halo_dma(h_hbm, halo_ref, sem, n, t, TH, H)

    scale = aff_ref[0:1, :].reshape(1, 1, Cout)
    shift = aff_ref[1:2, :].reshape(1, 1, Cout)
    _fill_main_act(act_ref, h_tile_ref[...], scale, shift)

    c_top.wait()
    c_bot.wait()
    _fill_halo_row(act_ref, halo_ref, 0, 0, scale, shift, t > 0)
    _fill_halo_row(act_ref, halo_ref, 1, TH + 1, scale, shift, t < T - 1)

    acc = _conv3x3(act_ref, w_ref, b_ref)                         # (TH*W, Cout) f32

    Cin = x_ref.shape[-1]
    if use_proj:                                                  # 1x1 conv residual projection
        xb = x_ref[...].astype(jnp.bfloat16).reshape(TH * W, Cin)
        res = jnp.dot(xb, wr_ref[...], preferred_element_type=jnp.float32) + br_ref[...]
    else:                                                         # nn.Identity
        res = x_ref[...].astype(jnp.float32).reshape(TH * W, Cin)

    out_ref[...] = (acc + res).reshape(TH, W, Cout).astype(out_ref.dtype)


# ----------------------------- JAX glue (O(N*C) only) -----------------------------

def _finalize_gn(mom, gamma, beta, hw):
    """mom: (N, 2, C) channel sums -> (N, 2, C) per-channel [scale, shift] for GN+affine."""
    N, _, C = mom.shape
    cg = C // GROUPS
    s1 = mom[:, 0, :].reshape(N, GROUPS, cg).sum(-1)
    s2 = mom[:, 1, :].reshape(N, GROUPS, cg).sum(-1)
    cnt = float(hw * cg)
    mean = s1 / cnt
    var = jnp.maximum(s2 / cnt - mean * mean, 0.0)                # catastrophic-cancel guard
    rstd = jax.lax.rsqrt(var + EPS)
    mean_c = jnp.repeat(mean, cg, axis=1)                         # (N, C)
    rstd_c = jnp.repeat(rstd, cg, axis=1)
    scale = gamma[None, :] * rstd_c
    shift = beta[None, :] - mean_c * scale
    return jnp.stack([scale, shift], axis=1).astype(jnp.float32)  # (N, 2, C)


# ----------------------------- wrapper -----------------------------

def vae_residual_block(x, p, in_channels, out_channels, *, tile_h=8):
    N, H, W, Cin = x.shape
    Cout = out_channels
    assert Cin == in_channels
    assert Cin % GROUPS == 0 and Cout % GROUPS == 0

    TH = tile_h if H % tile_h == 0 else H        # lower tile_h for tighter VMEM budgets (v7x)
    T = H // TH

    cparams = pltpu.CompilerParams(
        dimension_semantics=("parallel", "parallel"),
        vmem_limit_bytes=64 * 1024 * 1024,
    )

    # ---------- pass 1: GroupNorm-1 statistics ----------
    mom1 = pl.pallas_call(
        _gn_stats_kernel,
        out_shape=jax.ShapeDtypeStruct((N, T, 2, Cin), jnp.float32),
        grid=(N, T),
        in_specs=[pl.BlockSpec((None, TH, W, Cin), lambda n, t: (n, t, 0, 0))],
        out_specs=pl.BlockSpec((None, None, 2, Cin), lambda n, t: (n, t, 0, 0)),
        compiler_params=cparams,
    )(x)
    aff1 = _finalize_gn(mom1.sum(axis=1), p['g1'], p['b1'], H * W)

    # bf16 matmul operands (f32 accumulation stays in-kernel)
    w1 = p['w1'].reshape(9 * Cin, Cout).astype(jnp.bfloat16)
    b1 = p['cb1'].reshape(1, Cout).astype(jnp.float32)

    # ---------- pass 2: GN1 apply + SiLU + conv1 (+ GN2 partial stats) ----------
    h1, mom2 = pl.pallas_call(
        _norm_conv1_kernel,
        out_shape=(jax.ShapeDtypeStruct((N, H, W, Cout), jnp.bfloat16),
                   jax.ShapeDtypeStruct((N, T, 2, Cout), jnp.float32)),
        grid=(N, T),
        in_specs=[
            pl.BlockSpec((None, TH, W, Cin), lambda n, t: (n, t, 0, 0)),      # x tile (pipelined)
            pl.BlockSpec(memory_space=pl.ANY),                                # x in HBM (halo DMA)
            pl.BlockSpec((None, 2, Cin), lambda n, t: (n, 0, 0)),             # GN1 affine
            pl.BlockSpec((9 * Cin, Cout), lambda n, t: (0, 0)),               # conv1 weight (bf16)
            pl.BlockSpec((1, Cout), lambda n, t: (0, 0)),                     # conv1 bias
        ],
        out_specs=(pl.BlockSpec((None, TH, W, Cout), lambda n, t: (n, t, 0, 0)),
                   pl.BlockSpec((None, None, 2, Cout), lambda n, t: (n, t, 0, 0))),
        scratch_shapes=[
            pltpu.VMEM((2, W, Cin), x.dtype),                  # raw halo rows
            pltpu.VMEM((TH + 2, W + 2, Cin), jnp.float32),     # activated, padded window
            pltpu.SemaphoreType.DMA((2,)),
        ],
        compiler_params=cparams,
    )(x, x, aff1, w1, b1)

    aff2 = _finalize_gn(mom2.sum(axis=1), p['g2'], p['b2'], H * W)

    w2 = p['w2'].reshape(9 * Cout, Cout).astype(jnp.bfloat16)
    b2 = p['cb2'].reshape(1, Cout).astype(jnp.float32)

    # ---------- pass 3: GN2 apply + SiLU + conv2 + residual ----------
    use_proj = (Cin != Cout)
    kernel_c = functools.partial(_norm_conv2_res_kernel, use_proj=use_proj)

    in_specs = [
        pl.BlockSpec((None, TH, W, Cout), lambda n, t: (n, t, 0, 0)),         # h1 tile (pipelined)
        pl.BlockSpec(memory_space=pl.ANY),                                    # h1 in HBM (halo DMA)
        pl.BlockSpec((None, TH, W, Cin), lambda n, t: (n, t, 0, 0)),          # x tile (residual)
        pl.BlockSpec((None, 2, Cout), lambda n, t: (n, 0, 0)),                # GN2 affine
        pl.BlockSpec((9 * Cout, Cout), lambda n, t: (0, 0)),                  # conv2 weight (bf16)
        pl.BlockSpec((1, Cout), lambda n, t: (0, 0)),                         # conv2 bias
    ]
    args = [h1, h1, x, aff2, w2, b2]
    if use_proj:    # identity residual never DMAs a weight; projection adds a (Cin, Cout) bf16
        in_specs += [pl.BlockSpec((Cin, Cout), lambda n, t: (0, 0)),
                     pl.BlockSpec((1, Cout), lambda n, t: (0, 0))]
        args += [p['wr'].astype(jnp.bfloat16),
                 p['br'].reshape(1, Cout).astype(jnp.float32)]

    out = pl.pallas_call(
        kernel_c,
        out_shape=jax.ShapeDtypeStruct((N, H, W, Cout), x.dtype),
        grid=(N, T),
        in_specs=in_specs,
        out_specs=pl.BlockSpec((None, TH, W, Cout), lambda n, t: (n, t, 0, 0)),
        scratch_shapes=[
            pltpu.VMEM((2, W, Cout), jnp.bfloat16),            # raw halo rows of h1
            pltpu.VMEM((TH + 2, W + 2, Cout), jnp.float32),    # activated, padded window
            pltpu.SemaphoreType.DMA((2,)),
        ],
        compiler_params=cparams,
    )(*args)
    return out


# ----------------------------- params & pure-JAX reference -----------------------------

def make_params(key, in_ch, out_ch):
    ks = jax.random.split(key, 10)

    def conv_w(k, kh, kw, ci, co):
        std = 1.0 / jnp.sqrt(float(kh * kw * ci))
        return jax.random.normal(k, (kh, kw, ci, co), jnp.float32) * std

    p = dict(
        g1=1.0 + 0.1 * jax.random.normal(ks[0], (in_ch,), jnp.float32),
        b1=0.1 * jax.random.normal(ks[1], (in_ch,), jnp.float32),
        w1=conv_w(ks[2], 3, 3, in_ch, out_ch),
        cb1=0.1 * jax.random.normal(ks[3], (out_ch,), jnp.float32),
        g2=1.0 + 0.1 * jax.random.normal(ks[4], (out_ch,), jnp.float32),
        b2=0.1 * jax.random.normal(ks[5], (out_ch,), jnp.float32),
        w2=conv_w(ks[6], 3, 3, out_ch, out_ch),
        cb2=0.1 * jax.random.normal(ks[7], (out_ch,), jnp.float32),
    )
    if in_ch != out_ch:   # nn.Conv2d(in, out, kernel_size=1)
        p['wr'] = conv_w(ks[8], 1, 1, in_ch, out_ch)[0, 0]
        p['br'] = 0.1 * jax.random.normal(ks[9], (out_ch,), jnp.float32)
    return p


def ref_forward(x, p, in_ch, out_ch):
    def gn(v, g, b):
        N, H, W, C = v.shape
        vg = v.reshape(N, H, W, GROUPS, C // GROUPS)
        mean = vg.mean(axis=(1, 2, 4), keepdims=True)
        var = ((vg - mean) ** 2).mean(axis=(1, 2, 4), keepdims=True)
        vn = ((vg - mean) / jnp.sqrt(var + EPS)).reshape(N, H, W, C)
        return vn * g + b

    def silu(v):
        return v * jax.nn.sigmoid(v)

    def conv(v, w, b):
        y = jax.lax.conv_general_dilated(v, w, (1, 1), 'SAME',
                                         dimension_numbers=('NHWC', 'HWIO', 'NHWC'))
        return y + b

    h = conv(silu(gn(x, p['g1'], p['b1'])), p['w1'], p['cb1'])
    h = conv(silu(gn(h, p['g2'], p['b2'])), p['w2'], p['cb2'])
    if in_ch == out_ch:
        res = x
    else:
        res = jnp.einsum('nhwc,cd->nhwd', x, p['wr']) + p['br']
    return h + res


# ----------------------------- demo -----------------------------

if __name__ == "__main__":
    # GroupNorm(32, C) requires C % 32 == 0; use lane-dense channels (>=128) so conv outputs
    # get unmasked stores.  Test both the identity and the 1x1-projection residual paths.
    N, H, W = 2, 16, 16
    key = jax.random.PRNGKey(0)

    for (cin, cout) in [(128, 128), (128, 256)]:
        kx, kp = jax.random.split(jax.random.fold_in(key, cin * 1000 + cout))
        x = jax.random.normal(kx, (N, H, W, cin), jnp.float32)   # NHWC
        p = make_params(kp, cin, cout)

        out = jax.block_until_ready(vae_residual_block(x, p, cin, cout))
        assert out.shape == (N, H, W, cout)

        ref = jax.block_until_ready(ref_forward(x, p, cin, cout))
        err = jnp.abs(out - ref)
        max_err = float(jnp.max(err))
        mean_err = float(jnp.mean(err))
        # Tolerance accounts for bf16 MXU operands and the bf16 intermediate h1
        # (reference is end-to-end f32).
        assert max_err < 1e-1, f"({cin}->{cout}) max abs err {max_err}"
        assert mean_err < 1.2e-2, f"({cin}->{cout}) mean abs err {mean_err}"

    print("KERNEL_OK")
</pallas_src>

<mosaic_0001>
module attributes {stable_mosaic.version = 11 : i64} {
  func.func @_gn_stats_kernel(%arg0: i32, %arg1: i32, %arg2: memref<1x8x16x128xf32, #tpu.memory_space<vmem>>, %arg3: memref<1x1x2x128xf32, #tpu.memory_space<vmem>>) attributes {dimension_semantics = [#tpu.dimension_semantics<parallel>, #tpu.dimension_semantics<parallel>], iteration_bounds = array<i64: 2, 2>, scalar_prefetch = 0 : i64, scratch_operands = 0 : i64, tpu.core_type = #tpu.core_type<tc>, window_params = [{transform_indices = @transform_0, window_bounds = array<i64: 1, 8, 16, 128>}, {transform_indices = @transform_1, window_bounds = array<i64: 1, 1, 2, 128>}]} {
    %c0 = arith.constant 0 : index
    %c0_0 = arith.constant 0 : index
    %c0_1 = arith.constant 0 : index
    %c0_2 = arith.constant 0 : index
    %0 = vector.load %arg2[%c0, %c0_0, %c0_1, %c0_2] : memref<1x8x16x128xf32, #tpu.memory_space<vmem>>, vector<1x8x16x128xf32>
    %1 = vector.shape_cast %0 : vector<1x8x16x128xf32> to vector<8x16x128xf32>
    %2 = vector.shape_cast %1 : vector<8x16x128xf32> to vector<128x128xf32>
    %cst = arith.constant dense<0.000000e+00> : vector<128xf32>
    %3 = vector.multi_reduction <add>, %2, %cst [0] : vector<128x128xf32> to vector<128xf32>
    %4 = vector.shape_cast %3 : vector<128xf32> to vector<1x128xf32>
    %c0_3 = arith.constant 0 : index
    %c0_4 = arith.constant 0 : index
    %c0_5 = arith.constant 0 : index
    %c0_6 = arith.constant 0 : index
    %5 = vector.load %arg3[%c0_3, %c0_4, %c0_5, %c0_6] : memref<1x1x2x128xf32, #tpu.memory_space<vmem>>, vector<1x1x1x128xf32>
    %6 = vector.shape_cast %5 : vector<1x1x1x128xf32> to vector<1x128xf32>
    %7 = vector.shape_cast %4 : vector<1x128xf32> to vector<1x1x1x128xf32>
    tpu.vector_store %arg3[%c0_3, %c0_4, %c0_5, %c0_6], %7 {strides = array<i32>} : memref<1x1x2x128xf32, #tpu.memory_space<vmem>>, vector<1x1x1x128xf32>,
    %8 = arith.mulf %2, %2 : vector<128x128xf32>
    %cst_7 = arith.constant dense<0.000000e+00> : vector<128xf32>
    %9 = vector.multi_reduction <add>, %8, %cst_7 [0] : vector<128x128xf32> to vector<128xf32>
    %10 = vector.shape_cast %9 : vector<128xf32> to vector<1x128xf32>
    %c0_8 = arith.constant 0 : index
    %c0_9 = arith.constant 0 : index
    %c1 = arith.constant 1 : index
    %c0_10 = arith.constant 0 : index
    %11 = vector.load %arg3[%c0_8, %c0_9, %c1, %c0_10] : memref<1x1x2x128xf32, #tpu.memory_space<vmem>>, vector<1x1x1x128xf32>
    %12 = vector.shape_cast %11 : vector<1x1x1x128xf32> to vector<1x128xf32>
    %13 = vector.shape_cast %10 : vector<1x128xf32> to vector<1x1x1x128xf32>
    tpu.vector_store %arg3[%c0_8, %c0_9, %c1, %c0_10], %13 {strides = array<i32>} : memref<1x1x2x128xf32, #tpu.memory_space<vmem>>, vector<1x1x1x128xf32>,
    return
  }
  func.func @transform_0(%arg0: i32, %arg1: i32) -> (i32, i32, i32, i32) {
    %c0_i32 = arith.constant 0 : i32
    %c0_i32_0 = arith.constant 0 : i32
    %c0_i32_1 = arith.constant 0 : i32
    return %arg0, %arg1, %c0_i32, %c0_i32_0 : i32, i32, i32, i32
  }
  func.func @transform_1(%arg0: i32, %arg1: i32) -> (i32, i32, i32, i32) {
    %c0_i32 = arith.constant 0 : i32
    %c0_i32_0 = arith.constant 0 : i32
    %c0_i32_1 = arith.constant 0 : i32
    return %arg0, %arg1, %c0_i32, %c0_i32_0 : i32, i32, i32, i32
  }
}

</mosaic_0001>

<bundles_post_ra>
// kernel: tpu_custom_call.1
= control target key start
LH: loop header
LB: loop body
LE: loop exit
PB: predicated region body
PF: predicated region fallthrough
CT: control target
= control target key end

     0   :  { %6 = vsyncpa [#allocation3], 0  ;;  %s748_s0 = inlined_call_operand.hbm [shape: f32[2,16,16,128], index: 0, kind: input, shape index: {}]   ;;  %s749_s1 = inlined_call_operand.hbm [shape: f32[2,2,2,128], index: 1, kind: output, shape index: {}]  }
   0x1   :  { %8 = vsyncpa [#allocation3 + $0x1], 0 }
   0x2   :  { %9 = vsyncpa [#allocation4], 0 }
   0x3   :  { %11 = vsyncpa [#allocation4 + $0x1], 0  ;;  %s571_s6 = smov 0   ;;  %s573_s7 = smov 0  }
   0x4   :  { %s575_s8 = smov 0   ;;  %s577_s9 = smov 0  }
   0x5   :  { %s579_s10 = smov 0   ;;  %s581_s11 = smov 0  }
   0x6   :  { %s583_s12 = smov 0   ;;  %s585_s13 = smov 0  }
   0x7 LB: > { %s333_s14 = sadd.s32 4294967295, %s555_s13   ;;  %s334_s15 = sadd.s32 4294967294, %s555_s13   ;;  %s555_s13 = sphi %s585_s13, %s17_s13   ;;  %s551_s12 = sphi %s583_s12, %s761_s12   ;;  %s547_s11 = sphi %s581_s11, %s760_s11   ;;  %s543_s10 = sphi %s579_s10, %s759_s10   ;;  %s539_s9 = sphi %s577_s9, %s758_s9   ;;  %s535_s8 = sphi %s575_s8, %s757_s8   ;;  %s531_s7 = sphi %s573_s7, %s756_s7   ;;  %s527_s6 = sphi %s571_s6, %s755_s6  }
   0x8   : > { %s26_s16 = sadd.s32 1, %s547_s11  ;;  %s29_s17 = sadd.s32 1, %s551_s12 }
   0x9   : > { %p27_p0 = scmp.ge.s32.totalorder %s26_s16, 2  ;;  %s38_s18 = sadd.s32 1, %s535_s8 }
   0xa   : > { %p45_p1 = scmp.ne.s32.totalorder %s535_s8, %s531_s7  ;;  %p46_p2 = scmp.eq.s32.totalorder %s555_s13, 0 }
   0xb   : > { %s763_s16 = smov (%p27_p0, %s26_s16), 0  ;;  %s765_s17 = smov (!%p27_p0, %s29_s17), %s551_s12 }
   0xc   : > { %s34_s19 = ssub.s32 %s547_s11, %s763_s16  ;;  %p624_p3 = por %p46_p2, %p45_p1 }
   0xd   : > { %p31_p4 = scmp.ge.s32.totalorder %s765_s17, 2  ;;  %p51_p5 = scmp.ne.s32.totalorder %s531_s7, %s527_s6 }
   0xe   : > { %p52_p6 = scmp.eq.s32.totalorder %s333_s14, 0  ;;  %p77_p7 = scmp.eq.s32.totalorder %s333_s14, 3 }
   0xf   : > { %s767_s17 = smov (%p31_p4, %s765_s17), 0  ;;  %p83_p10 = scmp.eq.s32.totalorder %s334_s15, 3 }
  0x10   : > { %p632_p8 = por %p52_p6, %p51_p5  ;;  %p636_p9 = por %p77_p7, %p45_p1 }
  0x11   : > { %s33_s23 = ssub.s32 %s551_s12, %s767_s17  ;;  %p642_p12 = por %p83_p10, %p51_p5 }
  0x12   : > { %s35_s24 = sor.u32 %s34_s19, %s33_s23  ;;  %p363_p13 = scmp.lt.s32.totalorder %s555_s13, 4 }
  0x13   : > { %p36_p11 = scmp.eq.s32.totalorder %s35_s24, 0  ;;  %s103_s26 = sand.u32 1, %s535_s8  }
  0x14   : > { %s337_s28 = sshll.u32 %s103_s26, 7  ;;  %s350_s29 = sshll.u32 %s547_s11, 4 }
  0x15   : > { %s649_s27 = scalar_select %p36_p11, %s535_s8, %s38_s18  }
  0x16   : > { %s340_s30 = sshll.u32 %s551_s12, 5  ;;  %s107_s2 = scalar_lea.vmem [#allocation2], %s337_s28 }
  0x17   : > { %s117_s3 = sshll.u32 %s107_s2, 4  ;;  %s114_s4 = sadd.s32 %s350_s29, %s340_s30  ;;  %s118_s3 = int_to_ptr.vmem [resolvable:$true] %s117_s3 }
  0x18   : > { %s341_s5 = sshll.u32 %s114_s4, 7  ;;  %p655_p0 = pnand %p363_p13, %p624_p3 }
  0x19   : > { %s116_s23 = scalar_lea.hbm %s748_s0, %s341_s5  ;;  %s104_s18 = scalar_lea.sflag [#allocation3], %s103_s26 }
  0x1a   : > { %p433_p1 = pneg %p655_p0  ;;  %s444_s24 = scalar_lea.vmem %s118_s3, 2048 }
  0x1b   : > { %p445_p2 = scmp.ne.s32.totalorder %s118_s3, %s444_s24  ;;  %s557_s28 = smov [#allocation2]  }
  0x1c   : > { %s449_s29 = sshll.u32 %s557_s28, 4  ;;  %s450_s29 = int_to_ptr.vmem [resolvable:$false] %s449_s29 }
  0x1d   : > { %p447_p4 = pnand %p445_p2, %p433_p1  ;;  %s451_s20 = scalar_lea.vmem %s450_s29, 4096 }
  0x1e   : > { %p452_p3 = scmp.lt.s32.totalorder %s118_s3, %s450_s29  ;;  %p453_p6 = scmp.lt.s32.totalorder %s451_s20, %s444_s24 }
  0x1f   : > { %p448_p5 = pneg %p447_p4 }
  0x20   : > { %p454_p7 = por %p453_p6, %p452_p3 }
  0x22   : > { %p455_p10 = pnand %p454_p7, %p448_p5 }
  0x24   : > { %458 = shalt.err (!%p455_p10)
}
  0x25   : > { %s558_s30 = smov 128   ;;  %s559_s26 = smov 8  }
  0x26   : > { %358 = dma.hbm_to_vmem [thread:$0]  (!%p655_p0), %s116_s23, 2048, %s118_s3, %s104_s18, %s558_s30, %s558_s30, %s559_s26  }
  0x27   : > { %p342_p11 = scmp.ge.s32.totalorder %s555_s13, 1  ;;  %p125_p13 = scmp.lt.s32.totalorder %s555_s13, 5 }
  0x29   : > { %p126_p1 = pnand %p342_p11, %p125_p13 }
  0x2a   : > { %s669_s2 = sand.u32 (!%p126_p1), 1, %s531_s7  }
  0x2b   : > { %129 = sbr.rel (%p126_p1) target bundleno = 107 (0x6b), region = 24  ;;  %s343_s4 = sshll.u32 (!%p126_p1), %s669_s2, 7 }
  0x2c   : > { %s132_s5 = scalar_lea.sflag (!%p126_p1), [#allocation3], %s669_s2  ;;  %s673_s15 = scalar_lea.vmem (!%p126_p1), [#allocation2], %s343_s4 }
  0x30   : > { %518 = dma.done.wait (%p632_p8), %s132_s5, 2048  }
  0x31   : > { %520 = vsyncadd (%p632_p8), %s132_s5, 4294965248  ;;  %v155_v0 = vld [vmem:[%s673_s15] sm:$0xff]  ;;  %v156_v1 = vld [vmem:[%s673_s15 + $0x8] sm:$0xff]  ;;  %s344_s21 = sshll.u32 %s669_s2, 1  ;;  %s346_s3 = sshll.u32 %s543_s10, 1 }
  0x32   : > { %v157_v2 = vld [vmem:[%s673_s15 + $0x10] sm:$0xff]  ;;  %v158_v3 = vld [vmem:[%s673_s15 + $0x18] sm:$0xff]  ;;  %v171_v4 = vadd.f32 %v156_v1, %v155_v0  ;;  %v193_v5 = vmul.f32 %v155_v0, %v155_v0  ;;  %v194_v6 = vmul.f32 %v156_v1, %v156_v1  ;;  %v159_v8 = vld [vmem:[%s673_s15 + $0x20] sm:$0xff]  ;;  %s243_s14 = sadd.s32 %s539_s9, %s346_s3  ;;  %s153_s19 = scalar_lea.vmem [#allocation5], %s344_s21 }
  0x33   : > { %v195_v7 = vmul.f32 %v157_v2, %v157_v2  ;;  %v196_v10 = vmul.f32 %v158_v3, %v158_v3  ;;  %v160_v12 = vld [vmem:[%s673_s15 + $0x28] sm:$0xff]  ;;  %v197_v14 = vmul.f32 %v159_v8, %v159_v8  ;;  %v161_v16 = vld [vmem:[%s673_s15 + $0x30] sm:$0xff]  ;;  %v162_v20 = vld [vmem:[%s673_s15 + $0x38] sm:$0xff]  ;;  %s247_s23 = sshll.u32 %s153_s19, 4  ;;  %s347_s18 = sshll.u32 %s243_s14, 5  ;;  %s698_s23 = int_to_ptr.vmem [resolvable:$true] %s247_s23 }
  0x34   : > { %v172_v9 = vadd.f32 %v171_v4, %v157_v2  ;;  %v209_v11 = vadd.f32 %v194_v6, %v193_v5  ;;  %v198_v18 = vmul.f32 %v160_v12, %v160_v12  ;;  %v199_v22 = vmul.f32 %v161_v16, %v161_v16  ;;  %v163_v24 = vld [vmem:[%s673_s15 + $0x40] sm:$0xff]  ;;  %v164_v28 = vld [vmem:[%s673_s15 + $0x48] sm:$0xff]  ;;  %v165_v32 = vld [vmem:[%s673_s15 + $0x50] sm:$0xff]  ;;  %s245_s28 = scalar_lea.hbm %s749_s1, %s347_s18  ;;  %s232_s9 = scalar_lea.sflag [#allocation4], %s669_s2 }
  0x35   : > { %v200_v26 = vmul.f32 %v162_v20, %v162_v20  ;;  %v201_v30 = vmul.f32 %v163_v24, %v163_v24  ;;  %v202_v34 = vmul.f32 %v164_v28, %v164_v28  ;;  %v166_v36 = vld [vmem:[%s673_s15 + $0x58] sm:$0xff]  ;;  %v203_v38 = vmul.f32 %v165_v32, %v165_v32  ;;  %v167_v40 = vld [vmem:[%s673_s15 + $0x60] sm:$0xff]  ;;  %v168_v44 = vld [vmem:[%s673_s15 + $0x68] sm:$0xff]  ;;  %s459_s29 = scalar_lea.vmem %s698_s23, 32  ;;  %s560_s20 = smov [#allocation5]  }
  0x36   : > { %v173_v13 = vadd.f32 %v172_v9, %v158_v3  ;;  %v210_v15 = vadd.f32 %v209_v11, %v195_v7  ;;  %v204_v42 = vmul.f32 %v166_v36, %v166_v36  ;;  %v205_v46 = vmul.f32 %v167_v40, %v167_v40  ;;  %v169_v48 = vld [vmem:[%s673_s15 + $0x70] sm:$0xff]  ;;  %v170_v52 = vld [vmem:[%s673_s15 + $0x78] sm:$0xff]  ;;  %p460_p8 = scmp.ne.s32.totalorder %s698_s23, %s459_s29  ;;  %s463_s30 = sshll.u32 %s560_s20, 4  ;;  %s464_s30 = int_to_ptr.vmem [resolvable:$false] %s463_s30 }
  0x37   : > { %v206_v50 = vmul.f32 %v168_v44, %v168_v44  ;;  %v207_v54 = vmul.f32 %v169_v48, %v169_v48  ;;  %v208_v57 = vmul.f32 %v170_v52, %v170_v52  ;;  %s465_s26 = scalar_lea.vmem %s464_s30, 64  ;;  %p466_p4 = scmp.lt.s32.totalorder %s698_s23, %s464_s30 }
  0x38   : > { %v174_v17 = vadd.f32 %v173_v13, %v159_v8  ;;  %v211_v19 = vadd.f32 %v210_v15, %v196_v10  ;;  %p461_p0 = pnand %p460_p8, %p636_p9  ;;  %p467_p5 = scmp.lt.s32.totalorder %s465_s26, %s459_s29 }
  0x3a   : > { %v175_v21 = vadd.f32 %v174_v17, %v160_v12  ;;  %v212_v23 = vadd.f32 %v211_v19, %v197_v14  ;;  %p462_p2 = pneg %p461_p0  ;;  %p468_p3 = por %p467_p5, %p466_p4 }
  0x3c   : > { %v176_v25 = vadd.f32 %v175_v21, %v161_v16  ;;  %v213_v27 = vadd.f32 %v212_v23, %v198_v18  ;;  %p469_p6 = pnand %p468_p3, %p462_p2 }
  0x3e   : > { %v177_v29 = vadd.f32 %v176_v25, %v162_v20  ;;  %v214_v31 = vadd.f32 %v213_v27, %v199_v22 }
  0x40   : > { %v178_v33 = vadd.f32 %v177_v29, %v163_v24  ;;  %v215_v35 = vadd.f32 %v214_v31, %v200_v26 }
  0x42   : > { %v179_v37 = vadd.f32 %v178_v33, %v164_v28  ;;  %v216_v39 = vadd.f32 %v215_v35, %v201_v30 }
  0x44   : > { %v180_v41 = vadd.f32 %v179_v37, %v165_v32  ;;  %v217_v43 = vadd.f32 %v216_v39, %v202_v34 }
  0x46   : > { %v181_v45 = vadd.f32 %v180_v41, %v166_v36  ;;  %v218_v47 = vadd.f32 %v217_v43, %v203_v38 }
  0x48   : > { %v182_v49 = vadd.f32 %v181_v45, %v167_v40  ;;  %v219_v51 = vadd.f32 %v218_v47, %v204_v42 }
  0x4a   : > { %v183_v53 = vadd.f32 %v182_v49, %v168_v44  ;;  %v220_v55 = vadd.f32 %v219_v51, %v205_v46 }
  0x4c   : > { %v184_v56 = vadd.f32 %v183_v53, %v169_v48  ;;  %v221_v58 = vadd.f32 %v220_v55, %v206_v50 }
  0x4e   : > { %v185_v59 = vadd.f32 %v184_v56, %v170_v52  ;;  %v222_v60 = vadd.f32 %v221_v58, %v207_v54 }
  0x50   : > { %v186_v61 = vrot.slane %v185_v59, 4  ;;  %v223_v62 = vadd.f32 %v222_v60, %v208_v57 }
  0x52   : > { %v187_v63 = vadd.f32 %v186_v61, %v185_v59  ;;  %v224_v0 = vrot.slane %v223_v62, 4 }
  0x54   : > { %v188_v1 = vrot.slane %v187_v63, 2  ;;  %v225_v2 = vadd.f32 %v224_v0, %v223_v62 }
  0x56   : > { %v189_v3 = vadd.f32 %v188_v1, %v187_v63  ;;  %v226_v4 = vrot.slane %v225_v2, 2 }
  0x58   : > { %v190_v5 = vrot.slane %v189_v3, 1  ;;  %v227_v6 = vadd.f32 %v226_v4, %v225_v2 }
  0x5a   : > { %v191_v7 = vadd.f32 %v190_v5, %v189_v3  ;;  %v228_v8 = vrot.slane %v227_v6, 1 }
  0x5c   : > { %192 = vst [vmem:[%s153_s19] sm:$0x1] %v191_v7  ;;  %v229_v9 = vadd.f32 %v228_v8, %v227_v6 }
  0x5e   : > { %230 = vst [vmem:[%s153_s19 + $0x1] sm:$0x1] %v229_v9 }
  0x5f   : > { %472 = shalt.err (!%p469_p6)
}
  0x60   : > { %s473_s4 = scalar_lea.hbm %s245_s28, 32  ;;  %s477_s15 = scalar_lea.hbm %s749_s1, 128 }
  0x61   : > { %p474_p7 = scmp.ne.s32.totalorder %s245_s28, %s473_s4  ;;  %p478_p13 = scmp.lt.s32.totalorder %s245_s28, %s749_s1 }
  0x62   : > { %p479_p1 = scmp.lt.s32.totalorder %s477_s15, %s473_s4 }
  0x63   : > { %p475_p10 = pnand %p474_p7, %p636_p9 }
  0x64   : > { %p480_p8 = por %p479_p1, %p478_p13 }
  0x65   : > { %p476_p11 = pneg %p475_p10 }
  0x67   : > { %p481_p0 = pnand %p480_p8, %p476_p11 }
  0x69   : > { %484 = shalt.err (!%p481_p0)
}
  0x6a   : > { %353 = dma.vmem_to_hbm [thread:$0]  (%p636_p9), %s698_s23, 32, %s245_s28, %s232_s9  }
  0x6b PF: > { %p364_p2 = scmp.ge.s32.totalorder %s555_s13, 2  ;;  %s259_s14 = sand.u32 1, %s527_s6  }
  0x6c   : > { %s260_s19 = scalar_lea.sflag [#allocation4], %s259_s14 }
  0x6d   : > { %p360_p4 = pnand %p364_p2, %p642_p12 }
  0x6f   : > { %p361_p5 = pneg %p360_p4 }
  0x71   : > { %522 = dma.done.wait (%p361_p5), %s260_s19, 32  }
  0x72   : > { %524 = vsyncadd (%p361_p5), %s260_s19, 4294967264  ;;  %s17_s13 = sadd.s32 1, %s555_s13   ;;  %s755_s6 = smov %s531_s7 }
  0x73   : > { %p14_p3 = scmp.ge.s32.totalorder %s17_s13, 6   ;;  %s756_s7 = smov %s535_s8 }
  0x74   : > { %s757_s8 = smov %s649_s27  ;;  %s758_s9 = smov %s547_s11 }
  0x75   : > { %s759_s10 = smov %s551_s12  ;;  %s760_s11 = smov %s763_s16 }
  0x76   : > { %s761_s12 = smov %s767_s17  ;;  %16 = sbr.rel (!%p14_p3) target bundleno = 7 (0x7), region = 69 }
  0x7b   :  { %265 = vsyncpa [#allocation3], 1 }
  0x7c   :  { %267 = vsyncpa [#allocation3 + $0x1], 1 }
  0x7d   :  { %268 = vsyncpa [#allocation4], 1 }
  0x7e   :  { %270 = vsyncpa [#allocation4 + $0x1], 1 }

</bundles_post_ra>
